<compile_context>
chip_gen: v5e
topology: v5e:2x2
jax: 0.10.0
libtpu: 0.0.40
codegen_flags: <defaults>
</compile_context>

<pallas_src>
import functools

import jax
import jax.numpy as jnp
from jax import lax
from jax.experimental import pallas as pl
from jax.experimental.pallas import tpu as pltpu


def _round_up(x, m):
    return ((x + m - 1) // m) * m


def _pad_channels(a, axis, target):
    if a.shape[axis] == target:
        return a
    widths = [(0, 0)] * a.ndim
    widths[axis] = (0, target - a.shape[axis])
    return jnp.pad(a, widths)


def _weight_norm(v, g):
    """PyTorch weight_norm (default dim=0): per-out-channel norm over (C_in, K)."""
    norm = jnp.sqrt(jnp.sum(v * v, axis=(1, 2), keepdims=True))
    return g.reshape(-1, 1, 1) * v / norm


def _temporal_block_kernel(x_ref, w1_ref, b1_ref, w2_ref, b2_ref, *rest,
                           kernel_size, dilation, pad, pad_aligned,
                           batch_block, has_downsample):
    """Fused TemporalBlock forward for `batch_block` batch elements.

    x_ref   : (Bb, C_in_p, L)        (channel-padded, mxu dtype)
    w1_ref  : (C_out, K*C_in_p)      b1_ref : (C_out, 1) f32
    w2_ref  : (C_out, K*C_out)       b2_ref : (C_out, 1) f32
    [wd_ref : (C_out, C_in_p)        bd_ref : (C_out, 1) f32]  iff has_downsample
    out_ref : (Bb, C_out, L) f32
    xpad_ref: VMEM (C_in_p, PA + L)  left-zero-padded input,  PA % 128 == 0
    hpad_ref: VMEM (C_out,  PA + L)  left-zero-padded hidden, PA % 128 == 0
    """
    if has_downsample:
        wd_ref, bd_ref, out_ref, xpad_ref, hpad_ref = rest
    else:
        out_ref, xpad_ref, hpad_ref = rest

    K, d, PA = kernel_size, dilation, pad_aligned
    L = x_ref.shape[-1]
    c_out = w1_ref.shape[0]

    # Causal zeros: only the `pad` columns immediately left of the data are
    # ever read, so zero just those (tiny store), never the full buffer.
    if pad > 0:
        xpad_ref[:, pl.ds(PA - pad, pad)] = jnp.zeros(
            (xpad_ref.shape[0], pad), xpad_ref.dtype)
        hpad_ref[:, pl.ds(PA - pad, pad)] = jnp.zeros(
            (hpad_ref.shape[0], pad), hpad_ref.dtype)

    def causal_taps(src_ref):
        # Stack the K dilated causal taps along the sublane axis directly from
        # the ref => a single (K*C, L) MXU operand, one matmul per conv.
        return jnp.concatenate(
            [src_ref[:, pl.ds(PA - pad + k * d, L)] for k in range(K)], axis=0)

    for i in range(batch_block):                      # static, small
        x = x_ref[i]                                  # (C_in_p, L)

        # ---- conv1 (causal, dilated) -> bias + ReLU epilogue -------------
        xpad_ref[:, pl.ds(PA, L)] = x                 # 128-lane-aligned store
        acc1 = jnp.dot(w1_ref[...], causal_taps(xpad_ref),
                       preferred_element_type=jnp.float32)
        h1 = jnp.maximum(acc1 + b1_ref[...], 0.0)     # dropout1 = identity (eval)

        # ---- conv2 (causal, dilated) -> bias + ReLU epilogue -------------
        hpad_ref[:, pl.ds(PA, L)] = h1.astype(hpad_ref.dtype)
        acc2 = jnp.dot(w2_ref[...], causal_taps(hpad_ref),
                       preferred_element_type=jnp.float32)
        h2 = jnp.maximum(acc2 + b2_ref[...], 0.0)     # dropout2 = identity (eval)

        # ---- residual + final ReLU ----------------------------------------
        if has_downsample:
            res = jnp.dot(wd_ref[...], x,
                          preferred_element_type=jnp.float32) + bd_ref[...]
        else:
            res = x[:c_out, :].astype(jnp.float32)    # C_in == C_out here

        out_ref[i] = jnp.maximum(h2 + res, 0.0).astype(out_ref.dtype)


def temporal_block_forward(x, params, *, kernel_size, stride, dilation, padding,
                           batch_block=1, mxu_dtype=jnp.float32):
    """x: (B, C_in, L).  Returns (B, C_out, L) float32."""
    B, C_in, L = x.shape
    K = kernel_size
    assert stride == 1, "TODO(synk): stride != 1 not supported"
    assert padding == dilation * (kernel_size - 1), \
        "TemporalBlock residual requires padding == dilation*(kernel_size-1)"
    assert B % batch_block == 0

    w1 = _weight_norm(params["conv1_v"], params["conv1_g"])   # (C_out, C_in, K)
    w2 = _weight_norm(params["conv2_v"], params["conv2_g"])   # (C_out, C_out, K)
    C_out = w1.shape[0]

    # Round input channels up to a sublane multiple so the in-kernel tap
    # stacking is tile-aligned (zero channels contribute nothing).
    sub = 16 if mxu_dtype == jnp.bfloat16 else 8
    C_in_p = _round_up(C_in, sub)
    x_in = _pad_channels(x, 1, C_in_p).astype(mxu_dtype)

    # Tap-stacked weights (C_out, K*C): one MXU matmul per conv, contraction
    # depth K*C (layout matches the kernel's tap concatenation order).
    w1s = (jnp.transpose(_pad_channels(w1, 1, C_in_p), (0, 2, 1))
           .reshape(C_out, K * C_in_p).astype(mxu_dtype))
    w2s = (jnp.transpose(w2, (0, 2, 1))
           .reshape(C_out, K * C_out).astype(mxu_dtype))
    b1 = params["conv1_b"].reshape(C_out, 1).astype(jnp.float32)
    b2 = params["conv2_b"].reshape(C_out, 1).astype(jnp.float32)

    # Left pad rounded up to 128 lanes => per-step data store is lane-aligned.
    pad_aligned = _round_up(padding, 128)

    has_downsample = "down_w" in params
    kernel = functools.partial(
        _temporal_block_kernel, kernel_size=K, dilation=dilation,
        pad=padding, pad_aligned=pad_aligned, batch_block=batch_block,
        has_downsample=has_downsample)

    in_specs = [
        pl.BlockSpec((batch_block, C_in_p, L), lambda b: (b, 0, 0)),     # x
        pl.BlockSpec((C_out, K * C_in_p), lambda b: (0, 0)),             # w1 (resident)
        pl.BlockSpec((C_out, 1), lambda b: (0, 0)),                      # b1
        pl.BlockSpec((C_out, K * C_out), lambda b: (0, 0)),              # w2 (resident)
        pl.BlockSpec((C_out, 1), lambda b: (0, 0)),                      # b2
    ]
    args = [x_in, w1s, b1, w2s, b2]
    if has_downsample:
        wd = _pad_channels(params["down_w"].reshape(C_out, C_in), 1, C_in_p)
        bd = params["down_b"].reshape(C_out, 1).astype(jnp.float32)
        in_specs += [pl.BlockSpec((C_out, C_in_p), lambda b: (0, 0)),
                     pl.BlockSpec((C_out, 1), lambda b: (0, 0))]
        args += [wd.astype(mxu_dtype), bd]

    return pl.pallas_call(
        kernel,
        grid=(B // batch_block,),
        in_specs=in_specs,
        out_specs=pl.BlockSpec((batch_block, C_out, L), lambda b: (b, 0, 0)),
        out_shape=jax.ShapeDtypeStruct((B, C_out, L), jnp.float32),
        scratch_shapes=[pltpu.VMEM((C_in_p, pad_aligned + L), mxu_dtype),
                        pltpu.VMEM((C_out, pad_aligned + L), mxu_dtype)],
        compiler_params=pltpu.CompilerParams(
            dimension_semantics=("parallel",)),
    )(*args)


def _reference(x, params, *, kernel_size, stride, dilation, padding):
    """Pure-JAX reference mirroring the PyTorch forward (eval mode)."""
    B, C_in, L = x.shape
    w1 = _weight_norm(params["conv1_v"], params["conv1_g"])
    w2 = _weight_norm(params["conv2_v"], params["conv2_g"])
    C_out = w1.shape[0]
    dn = ("NCH", "OIH", "NCH")

    def causal_conv(inp, w, b):
        y = lax.conv_general_dilated(
            inp, w, window_strides=(stride,), padding=[(padding, padding)],
            rhs_dilation=(dilation,), dimension_numbers=dn)
        y = y[:, :, :L]                     # Chomp1d(padding)
        return y + b[None, :, None]

    h = jax.nn.relu(causal_conv(x, w1, params["conv1_b"]))
    h = jax.nn.relu(causal_conv(h, w2, params["conv2_b"]))
    if "down_w" in params:
        res = jnp.einsum("oc,bcl->bol", params["down_w"].reshape(C_out, C_in), x)
        res = res + params["down_b"][None, :, None]
    else:
        res = x
    return jax.nn.relu(h + res)


if __name__ == "__main__":
    # Small shapes consistent with TemporalBlock: (B, n_inputs, seq_len).
    B, C_in, C_out, L = 2, 4, 8, 16
    K, stride, dilation = 3, 1, 2
    padding = (K - 1) * dilation            # standard TCN causal padding = 4

    key = jax.random.PRNGKey(0)
    ks = jax.random.split(key, 9)
    x = jax.random.normal(ks[0], (B, C_in, L), jnp.float32)
    params = {
        # weight_norm parameterization: v (direction) and g (magnitude)
        "conv1_v": 0.01 * jax.random.normal(ks[1], (C_out, C_in, K), jnp.float32),
        "conv1_g": jax.random.uniform(ks[2], (C_out,), jnp.float32, 0.5, 1.5),
        "conv1_b": 0.1 * jax.random.normal(ks[3], (C_out,), jnp.float32),
        "conv2_v": 0.01 * jax.random.normal(ks[4], (C_out, C_out, K), jnp.float32),
        "conv2_g": jax.random.uniform(ks[5], (C_out,), jnp.float32, 0.5, 1.5),
        "conv2_b": 0.1 * jax.random.normal(ks[6], (C_out,), jnp.float32),
        # downsample exists because n_inputs != n_outputs
        "down_w": 0.01 * jax.random.normal(ks[7], (C_out, C_in, 1), jnp.float32),
        "down_b": 0.1 * jax.random.normal(ks[8], (C_out,), jnp.float32),
    }

    # Tiny demo shapes: fold the whole batch into one grid step (amortizes the
    # per-step overhead).  For large B keep >= 2 grid steps so both v7x
    # TensorCores get work.  Use mxu_dtype=jnp.bfloat16 on v6e/v7x for
    # MXU-native operands (f32 accumulation); f32 here for a tight check.
    out = temporal_block_forward(x, params, kernel_size=K, stride=stride,
                                 dilation=dilation, padding=padding,
                                 batch_block=B, mxu_dtype=jnp.float32)
    out = jax.block_until_ready(out)

    ref = _reference(x, params, kernel_size=K, stride=stride,
                     dilation=dilation, padding=padding)
    assert out.shape == (B, C_out, L)
    assert jnp.allclose(out, ref, atol=1e-4, rtol=1e-4), \
        float(jnp.max(jnp.abs(out - ref)))

    print("KERNEL_OK")
</pallas_src>

<mosaic_0001>
module attributes {stable_mosaic.version = 11 : i64} {
  func.func @_temporal_block_kernel(%arg0: i32, %arg1: memref<2x8x16xf32, #tpu.memory_space<vmem>>, %arg2: memref<8x24xf32, #tpu.memory_space<vmem>>, %arg3: memref<8x1xf32, #tpu.memory_space<vmem>>, %arg4: memref<8x24xf32, #tpu.memory_space<vmem>>, %arg5: memref<8x1xf32, #tpu.memory_space<vmem>>, %arg6: memref<8x8xf32, #tpu.memory_space<vmem>>, %arg7: memref<8x1xf32, #tpu.memory_space<vmem>>, %arg8: memref<2x8x16xf32, #tpu.memory_space<vmem>>, %arg9: memref<8x144xf32, #tpu.memory_space<vmem>>, %arg10: memref<8x144xf32, #tpu.memory_space<vmem>>) attributes {dimension_semantics = [#tpu.dimension_semantics<parallel>], iteration_bounds = array<i64: 1>, scalar_prefetch = 0 : i64, scratch_operands = 2 : i64, tpu.core_type = #tpu.core_type<tc>, window_params = [{transform_indices = @transform_0, window_bounds = array<i64: 2, 8, 16>}, {pipeline_mode = #tpu.pipeline_mode<synchronous>, transform_indices = @transform_1, window_bounds = array<i64: 8, 24>}, {pipeline_mode = #tpu.pipeline_mode<synchronous>, transform_indices = @transform_2, window_bounds = array<i64: 8, 1>}, {pipeline_mode = #tpu.pipeline_mode<synchronous>, transform_indices = @transform_3, window_bounds = array<i64: 8, 24>}, {pipeline_mode = #tpu.pipeline_mode<synchronous>, transform_indices = @transform_4, window_bounds = array<i64: 8, 1>}, {pipeline_mode = #tpu.pipeline_mode<synchronous>, transform_indices = @transform_5, window_bounds = array<i64: 8, 8>}, {pipeline_mode = #tpu.pipeline_mode<synchronous>, transform_indices = @transform_6, window_bounds = array<i64: 8, 1>}, {transform_indices = @transform_7, window_bounds = array<i64: 2, 8, 16>}]} {
    %cst = arith.constant 0.000000e+00 : f32
    %0 = vector.broadcast %cst : f32 to vector<8x4xf32>
    %c0 = arith.constant 0 : index
    %c124 = arith.constant 124 : index
    %1 = vector.load %arg9[%c0, %c124] : memref<8x144xf32, #tpu.memory_space<vmem>>, vector<8x4xf32>
    tpu.vector_store %arg9[%c0, %c124], %0 {strides = array<i32>} : memref<8x144xf32, #tpu.memory_space<vmem>>, vector<8x4xf32>,
    %cst_0 = arith.constant 0.000000e+00 : f32
    %2 = vector.broadcast %cst_0 : f32 to vector<8x4xf32>
    %c0_1 = arith.constant 0 : index
    %c124_2 = arith.constant 124 : index
    %3 = vector.load %arg10[%c0_1, %c124_2] : memref<8x144xf32, #tpu.memory_space<vmem>>, vector<8x4xf32>
    tpu.vector_store %arg10[%c0_1, %c124_2], %2 {strides = array<i32>} : memref<8x144xf32, #tpu.memory_space<vmem>>, vector<8x4xf32>,
    %c0_3 = arith.constant 0 : index
    %c0_4 = arith.constant 0 : index
    %c0_5 = arith.constant 0 : index
    %4 = vector.load %arg1[%c0_3, %c0_4, %c0_5] : memref<2x8x16xf32, #tpu.memory_space<vmem>>, vector<1x8x16xf32>
    %5 = vector.shape_cast %4 : vector<1x8x16xf32> to vector<8x16xf32>
    %c0_6 = arith.constant 0 : index
    %c128 = arith.constant 128 : index
    %6 = vector.load %arg9[%c0_6, %c128] : memref<8x144xf32, #tpu.memory_space<vmem>>, vector<8x16xf32>
    tpu.vector_store %arg9[%c0_6, %c128], %5 {strides = array<i32>} : memref<8x144xf32, #tpu.memory_space<vmem>>, vector<8x16xf32>,
    %c0_7 = arith.constant 0 : index
    %c0_8 = arith.constant 0 : index
    %7 = vector.load %arg2[%c0_7, %c0_8] : memref<8x24xf32, #tpu.memory_space<vmem>>, vector<8x24xf32>
    %c0_9 = arith.constant 0 : index
    %c124_10 = arith.constant 124 : index
    %8 = vector.load %arg9[%c0_9, %c124_10] : memref<8x144xf32, #tpu.memory_space<vmem>>, vector<8x16xf32>
    %c0_11 = arith.constant 0 : index
    %c126 = arith.constant 126 : index
    %9 = vector.load %arg9[%c0_11, %c126] : memref<8x144xf32, #tpu.memory_space<vmem>>, vector<8x16xf32>
    %c0_12 = arith.constant 0 : index
    %c128_13 = arith.constant 128 : index
    %10 = vector.load %arg9[%c0_12, %c128_13] : memref<8x144xf32, #tpu.memory_space<vmem>>, vector<8x16xf32>
    %11 = tpu.concatenate %8, %9, %10 in 0 : vector<8x16xf32>, vector<8x16xf32>, vector<8x16xf32> -> vector<24x16xf32>
    %cst_14 = arith.constant dense<0.000000e+00> : vector<8x16xf32>
    %12 = tpu.matmul %7, %11, %cst_14 {dimension_numbers = #tpu.dot_dimension_numbers<[1], [0], [0], [1], [0, 0, 1, 1], [], []>} : vector<8x24xf32>, vector<24x16xf32>, vector<8x16xf32> -> vector<8x16xf32>
    %c0_15 = arith.constant 0 : index
    %c0_16 = arith.constant 0 : index
    %13 = vector.load %arg3[%c0_15, %c0_16] : memref<8x1xf32, #tpu.memory_space<vmem>>, vector<8x1xf32>
    %14 = vector.broadcast %13 : vector<8x1xf32> to vector<8x16xf32>
    %15 = arith.addf %12, %14 : vector<8x16xf32>
    %cst_17 = arith.constant 0.000000e+00 : f32
    %16 = vector.broadcast %cst_17 : f32 to vector<8x16xf32>
    %17 = arith.maximumf %15, %16 : vector<8x16xf32>
    %c0_18 = arith.constant 0 : index
    %c128_19 = arith.constant 128 : index
    %18 = vector.load %arg10[%c0_18, %c128_19] : memref<8x144xf32, #tpu.memory_space<vmem>>, vector<8x16xf32>
    tpu.vector_store %arg10[%c0_18, %c128_19], %17 {strides = array<i32>} : memref<8x144xf32, #tpu.memory_space<vmem>>, vector<8x16xf32>,
    %c0_20 = arith.constant 0 : index
    %c0_21 = arith.constant 0 : index
    %19 = vector.load %arg4[%c0_20, %c0_21] : memref<8x24xf32, #tpu.memory_space<vmem>>, vector<8x24xf32>
    %c0_22 = arith.constant 0 : index
    %c124_23 = arith.constant 124 : index
    %20 = vector.load %arg10[%c0_22, %c124_23] : memref<8x144xf32, #tpu.memory_space<vmem>>, vector<8x16xf32>
    %c0_24 = arith.constant 0 : index
    %c126_25 = arith.constant 126 : index
    %21 = vector.load %arg10[%c0_24, %c126_25] : memref<8x144xf32, #tpu.memory_space<vmem>>, vector<8x16xf32>
    %c0_26 = arith.constant 0 : index
    %c128_27 = arith.constant 128 : index
    %22 = vector.load %arg10[%c0_26, %c128_27] : memref<8x144xf32, #tpu.memory_space<vmem>>, vector<8x16xf32>
    %23 = tpu.concatenate %20, %21, %22 in 0 : vector<8x16xf32>, vector<8x16xf32>, vector<8x16xf32> -> vector<24x16xf32>
    %cst_28 = arith.constant dense<0.000000e+00> : vector<8x16xf32>
    %24 = tpu.matmul %19, %23, %cst_28 {dimension_numbers = #tpu.dot_dimension_numbers<[1], [0], [0], [1], [0, 0, 1, 1], [], []>} : vector<8x24xf32>, vector<24x16xf32>, vector<8x16xf32> -> vector<8x16xf32>
    %c0_29 = arith.constant 0 : index
    %c0_30 = arith.constant 0 : index
    %25 = vector.load %arg5[%c0_29, %c0_30] : memref<8x1xf32, #tpu.memory_space<vmem>>, vector<8x1xf32>
    %26 = vector.broadcast %25 : vector<8x1xf32> to vector<8x16xf32>
    %27 = arith.addf %24, %26 : vector<8x16xf32>
    %cst_31 = arith.constant 0.000000e+00 : f32
    %28 = vector.broadcast %cst_31 : f32 to vector<8x16xf32>
    %29 = arith.maximumf %27, %28 : vector<8x16xf32>
    %c0_32 = arith.constant 0 : index
    %c0_33 = arith.constant 0 : index
    %30 = vector.load %arg6[%c0_32, %c0_33] : memref<8x8xf32, #tpu.memory_space<vmem>>, vector<8x8xf32>
    %cst_34 = arith.constant dense<0.000000e+00> : vector<8x16xf32>
    %31 = tpu.matmul %30, %5, %cst_34 {dimension_numbers = #tpu.dot_dimension_numbers<[1], [0], [0], [1], [0, 0, 1, 1], [], []>} : vector<8x8xf32>, vector<8x16xf32>, vector<8x16xf32> -> vector<8x16xf32>
    %c0_35 = arith.constant 0 : index
    %c0_36 = arith.constant 0 : index
    %32 = vector.load %arg7[%c0_35, %c0_36] : memref<8x1xf32, #tpu.memory_space<vmem>>, vector<8x1xf32>
    %33 = vector.broadcast %32 : vector<8x1xf32> to vector<8x16xf32>
    %34 = arith.addf %31, %33 : vector<8x16xf32>
    %35 = arith.addf %29, %34 : vector<8x16xf32>
    %cst_37 = arith.constant 0.000000e+00 : f32
    %36 = vector.broadcast %cst_37 : f32 to vector<8x16xf32>
    %37 = arith.maximumf %35, %36 : vector<8x16xf32>
    %c0_38 = arith.constant 0 : index
    %c0_39 = arith.constant 0 : index
    %c0_40 = arith.constant 0 : index
    %38 = vector.load %arg8[%c0_38, %c0_39, %c0_40] : memref<2x8x16xf32, #tpu.memory_space<vmem>>, vector<1x8x16xf32>
    %39 = vector.shape_cast %38 : vector<1x8x16xf32> to vector<8x16xf32>
    %40 = vector.shape_cast %37 : vector<8x16xf32> to vector<1x8x16xf32>
    tpu.vector_store %arg8[%c0_38, %c0_39, %c0_40], %40 {strides = array<i32>} : memref<2x8x16xf32, #tpu.memory_space<vmem>>, vector<1x8x16xf32>,
    %c1 = arith.constant 1 : index
    %c0_41 = arith.constant 0 : index
    %c0_42 = arith.constant 0 : index
    %41 = vector.load %arg1[%c1, %c0_41, %c0_42] : memref<2x8x16xf32, #tpu.memory_space<vmem>>, vector<1x8x16xf32>
    %42 = vector.shape_cast %41 : vector<1x8x16xf32> to vector<8x16xf32>
    %c0_43 = arith.constant 0 : index
    %c128_44 = arith.constant 128 : index
    %43 = vector.load %arg9[%c0_43, %c128_44] : memref<8x144xf32, #tpu.memory_space<vmem>>, vector<8x16xf32>
    tpu.vector_store %arg9[%c0_43, %c128_44], %42 {strides = array<i32>} : memref<8x144xf32, #tpu.memory_space<vmem>>, vector<8x16xf32>,
    %c0_45 = arith.constant 0 : index
    %c0_46 = arith.constant 0 : index
    %44 = vector.load %arg2[%c0_45, %c0_46] : memref<8x24xf32, #tpu.memory_space<vmem>>, vector<8x24xf32>
    %c0_47 = arith.constant 0 : index
    %c124_48 = arith.constant 124 : index
    %45 = vector.load %arg9[%c0_47, %c124_48] : memref<8x144xf32, #tpu.memory_space<vmem>>, vector<8x16xf32>
    %c0_49 = arith.constant 0 : index
    %c126_50 = arith.constant 126 : index
    %46 = vector.load %arg9[%c0_49, %c126_50] : memref<8x144xf32, #tpu.memory_space<vmem>>, vector<8x16xf32>
    %c0_51 = arith.constant 0 : index
    %c128_52 = arith.constant 128 : index
    %47 = vector.load %arg9[%c0_51, %c128_52] : memref<8x144xf32, #tpu.memory_space<vmem>>, vector<8x16xf32>
    %48 = tpu.concatenate %45, %46, %47 in 0 : vector<8x16xf32>, vector<8x16xf32>, vector<8x16xf32> -> vector<24x16xf32>
    %cst_53 = arith.constant dense<0.000000e+00> : vector<8x16xf32>
    %49 = tpu.matmul %44, %48, %cst_53 {dimension_numbers = #tpu.dot_dimension_numbers<[1], [0], [0], [1], [0, 0, 1, 1], [], []>} : vector<8x24xf32>, vector<24x16xf32>, vector<8x16xf32> -> vector<8x16xf32>
    %c0_54 = arith.constant 0 : index
    %c0_55 = arith.constant 0 : index
    %50 = vector.load %arg3[%c0_54, %c0_55] : memref<8x1xf32, #tpu.memory_space<vmem>>, vector<8x1xf32>
    %51 = vector.broadcast %50 : vector<8x1xf32> to vector<8x16xf32>
    %52 = arith.addf %49, %51 : vector<8x16xf32>
    %cst_56 = arith.constant 0.000000e+00 : f32
    %53 = vector.broadcast %cst_56 : f32 to vector<8x16xf32>
    %54 = arith.maximumf %52, %53 : vector<8x16xf32>
    %c0_57 = arith.constant 0 : index
    %c128_58 = arith.constant 128 : index
    %55 = vector.load %arg10[%c0_57, %c128_58] : memref<8x144xf32, #tpu.memory_space<vmem>>, vector<8x16xf32>
    tpu.vector_store %arg10[%c0_57, %c128_58], %54 {strides = array<i32>} : memref<8x144xf32, #tpu.memory_space<vmem>>, vector<8x16xf32>,
    %c0_59 = arith.constant 0 : index
    %c0_60 = arith.constant 0 : index
    %56 = vector.load %arg4[%c0_59, %c0_60] : memref<8x24xf32, #tpu.memory_space<vmem>>, vector<8x24xf32>
    %c0_61 = arith.constant 0 : index
    %c124_62 = arith.constant 124 : index
    %57 = vector.load %arg10[%c0_61, %c124_62] : memref<8x144xf32, #tpu.memory_space<vmem>>, vector<8x16xf32>
    %c0_63 = arith.constant 0 : index
    %c126_64 = arith.constant 126 : index
    %58 = vector.load %arg10[%c0_63, %c126_64] : memref<8x144xf32, #tpu.memory_space<vmem>>, vector<8x16xf32>
    %c0_65 = arith.constant 0 : index
    %c128_66 = arith.constant 128 : index
    %59 = vector.load %arg10[%c0_65, %c128_66] : memref<8x144xf32, #tpu.memory_space<vmem>>, vector<8x16xf32>
    %60 = tpu.concatenate %57, %58, %59 in 0 : vector<8x16xf32>, vector<8x16xf32>, vector<8x16xf32> -> vector<24x16xf32>
    %cst_67 = arith.constant dense<0.000000e+00> : vector<8x16xf32>
    %61 = tpu.matmul %56, %60, %cst_67 {dimension_numbers = #tpu.dot_dimension_numbers<[1], [0], [0], [1], [0, 0, 1, 1], [], []>} : vector<8x24xf32>, vector<24x16xf32>, vector<8x16xf32> -> vector<8x16xf32>
    %c0_68 = arith.constant 0 : index
    %c0_69 = arith.constant 0 : index
    %62 = vector.load %arg5[%c0_68, %c0_69] : memref<8x1xf32, #tpu.memory_space<vmem>>, vector<8x1xf32>
    %63 = vector.broadcast %62 : vector<8x1xf32> to vector<8x16xf32>
    %64 = arith.addf %61, %63 : vector<8x16xf32>
    %cst_70 = arith.constant 0.000000e+00 : f32
    %65 = vector.broadcast %cst_70 : f32 to vector<8x16xf32>
    %66 = arith.maximumf %64, %65 : vector<8x16xf32>
    %c0_71 = arith.constant 0 : index
    %c0_72 = arith.constant 0 : index
    %67 = vector.load %arg6[%c0_71, %c0_72] : memref<8x8xf32, #tpu.memory_space<vmem>>, vector<8x8xf32>
    %cst_73 = arith.constant dense<0.000000e+00> : vector<8x16xf32>
    %68 = tpu.matmul %67, %42, %cst_73 {dimension_numbers = #tpu.dot_dimension_numbers<[1], [0], [0], [1], [0, 0, 1, 1], [], []>} : vector<8x8xf32>, vector<8x16xf32>, vector<8x16xf32> -> vector<8x16xf32>
    %c0_74 = arith.constant 0 : index
    %c0_75 = arith.constant 0 : index
    %69 = vector.load %arg7[%c0_74, %c0_75] : memref<8x1xf32, #tpu.memory_space<vmem>>, vector<8x1xf32>
    %70 = vector.broadcast %69 : vector<8x1xf32> to vector<8x16xf32>
    %71 = arith.addf %68, %70 : vector<8x16xf32>
    %72 = arith.addf %66, %71 : vector<8x16xf32>
    %cst_76 = arith.constant 0.000000e+00 : f32
    %73 = vector.broadcast %cst_76 : f32 to vector<8x16xf32>
    %74 = arith.maximumf %72, %73 : vector<8x16xf32>
    %c1_77 = arith.constant 1 : index
    %c0_78 = arith.constant 0 : index
    %c0_79 = arith.constant 0 : index
    %75 = vector.load %arg8[%c1_77, %c0_78, %c0_79] : memref<2x8x16xf32, #tpu.memory_space<vmem>>, vector<1x8x16xf32>
    %76 = vector.shape_cast %75 : vector<1x8x16xf32> to vector<8x16xf32>
    %77 = vector.shape_cast %74 : vector<8x16xf32> to vector<1x8x16xf32>
    tpu.vector_store %arg8[%c1_77, %c0_78, %c0_79], %77 {strides = array<i32>} : memref<2x8x16xf32, #tpu.memory_space<vmem>>, vector<1x8x16xf32>,
    return
  }
  func.func @transform_0(%arg0: i32) -> (i32, i32, i32) {
    %c0_i32 = arith.constant 0 : i32
    %c0_i32_0 = arith.constant 0 : i32
    %c0_i32_1 = arith.constant 0 : i32
    return %arg0, %c0_i32, %c0_i32_0 : i32, i32, i32
  }
  func.func @transform_1(%arg0: i32) -> (i32, i32) {
    %c0_i32 = arith.constant 0 : i32
    %c0_i32_0 = arith.constant 0 : i32
    %c0_i32_1 = arith.constant 0 : i32
    return %c0_i32, %c0_i32_0 : i32, i32
  }
  func.func @transform_2(%arg0: i32) -> (i32, i32) {
    %c0_i32 = arith.constant 0 : i32
    %c0_i32_0 = arith.constant 0 : i32
    %c0_i32_1 = arith.constant 0 : i32
    return %c0_i32, %c0_i32_0 : i32, i32
  }
  func.func @transform_3(%arg0: i32) -> (i32, i32) {
    %c0_i32 = arith.constant 0 : i32
    %c0_i32_0 = arith.constant 0 : i32
    %c0_i32_1 = arith.constant 0 : i32
    return %c0_i32, %c0_i32_0 : i32, i32
  }
  func.func @transform_4(%arg0: i32) -> (i32, i32) {
    %c0_i32 = arith.constant 0 : i32
    %c0_i32_0 = arith.constant 0 : i32
    %c0_i32_1 = arith.constant 0 : i32
    return %c0_i32, %c0_i32_0 : i32, i32
  }
  func.func @transform_5(%arg0: i32) -> (i32, i32) {
    %c0_i32 = arith.constant 0 : i32
    %c0_i32_0 = arith.constant 0 : i32
    %c0_i32_1 = arith.constant 0 : i32
    return %c0_i32, %c0_i32_0 : i32, i32
  }
  func.func @transform_6(%arg0: i32) -> (i32, i32) {
    %c0_i32 = arith.constant 0 : i32
    %c0_i32_0 = arith.constant 0 : i32
    %c0_i32_1 = arith.constant 0 : i32
    return %c0_i32, %c0_i32_0 : i32, i32
  }
  func.func @transform_7(%arg0: i32) -> (i32, i32, i32) {
    %c0_i32 = arith.constant 0 : i32
    %c0_i32_0 = arith.constant 0 : i32
    %c0_i32_1 = arith.constant 0 : i32
    return %arg0, %c0_i32, %c0_i32_0 : i32, i32, i32
  }
}

</mosaic_0001>

<bundles_post_ra>
// kernel: tpu_custom_call.1
= control target key start
LH: loop header
LB: loop body
LE: loop exit
PB: predicated region body
PF: predicated region fallthrough
CT: control target
= control target key end

     0   :  { %12 = vsyncpa [#allocation5], 0  ;;  %s678_s0 = inlined_call_operand.vmem [shape: f32[2,8,16], index: 0, kind: input, shape index: {}]   ;;  %s679_s1 = inlined_call_operand.vmem [shape: f32[8,24], index: 1, kind: input, shape index: {}]   ;;  %s680_s2 = inlined_call_operand.vmem [shape: f32[8,1], index: 2, kind: input, shape index: {}]   ;;  %s681_s3 = inlined_call_operand.hbm [shape: f32[8,24], index: 3, kind: input, shape index: {}]   ;;  %s682_s4 = inlined_call_operand.vmem [shape: f32[8,1], index: 4, kind: input, shape index: {}]   ;;  %s683_s5 = inlined_call_operand.hbm [shape: f32[8,8], index: 5, kind: input, shape index: {}]   ;;  %s684_s6 = inlined_call_operand.vmem [shape: f32[8,1], index: 6, kind: input, shape index: {}]   ;;  %s685_s7 = inlined_call_operand.hbm [shape: f32[2,8,16], index: 7, kind: output, shape index: {}]  }
   0x1   :  { %13 = vsyncpa [#allocation8], 0 }
   0x2   :  { %14 = vsyncpa [#allocation6], 0  ;;  %s26_s26 = sshll.u32 %s681_s3, 4  ;;  %s558_s27 = smov [#allocation4]   ;;  %s27_s26 = int_to_ptr.hbm [resolvable:$true] %s26_s26 }
   0x3   :  { %s28_s28 = sshll.u32 %s558_s27, 4  ;;  %s39_s8 = sshll.u32 %s683_s5, 4  ;;  %s29_s28 = int_to_ptr.vmem [resolvable:$true] %s28_s28  ;;  %s40_s8 = int_to_ptr.hbm [resolvable:$true] %s39_s8 }
   0x4   :  { %31 = dma.hbm_to_vmem [thread:$0]  %s27_s26, 128, %s29_s28, [#allocation5]  }
   0x5   :  { %s559_s9 = smov [#allocation7]  }
   0x6   :  { %s41_s10 = sshll.u32 %s559_s9, 4  ;;  %s42_s10 = int_to_ptr.vmem [resolvable:$true] %s41_s10 }
   0x7   :  { %44 = dma.hbm_to_vmem [thread:$0]  %s40_s8, 128, %s42_s10, [#allocation8]  }
   0x8   :  { %552 = dma.done.wait [#allocation5], 128  }
   0x9   :  { %553 = vsyncadd [#allocation5], 4294967168 }
   0xa   :  { %554 = dma.done.wait [#allocation8], 128  }
   0xb   :  { %555 = vsyncadd [#allocation8], 4294967168  ;;  %vm55_vm0 = vcmask 1048544   ;;  %v560_v0 = vmov 0.0   ;;  %vm59_vm1 = vcmask 130048   ;;  %v58_v1 = vld [vmem:[%s678_s0] sm:$0xff] }
   0xc   :  { %56 = vst.msk [vmem:[#allocation2] sm:$0xff] %vm55_vm0, %v560_v0  ;;  %205 = vmatpush.msra.mxu2 %v58_v1  ;;  %v621_v3 = vld [vmem:[%s678_s0 + $0x8] sm:$0xff]  ;;  %s561_s13 = smov 126   ;;  %s562_s14 = smov 124   ;;  %vm70_vm2 = vcmask 1031168   ;;  %v228_v25 = vld [vmem:[%s680_s2] sm:$0xff] }
   0xd   :  { %57 = vst.msk [vmem:[#allocation3] sm:$0xff] %vm55_vm0, %v560_v0  ;;  %s563_s0 = smov 4   ;;  %v564_v26 = vmov 0   ;;  %vm90_vm3 = vcmask 31744   ;;  %v61_v40 = vld [vmem:[%s679_s1] sm:$0xff]  ;;  %vm96_vm4 = vcmask 195584  }
   0xe   :  { %60 = vst.msk [vmem:[#allocation2 + $0x8] sm:$0xff] %vm59_vm1, %v58_v1  ;;  %443 = vset.pattern.permute.xlu0 %v564_v26  ;;  %442 = vset.pattern.permute.xlu2 %v564_v26  ;;  %vm186_vm5 = vcmask 64512   ;;  %v331_v48 = vld [vmem:[#allocation7] sm:$0xff]  ;;  %v134_v62 = vld [vmem:[%s682_s4] sm:$0xff]  ;;  %s565_s4 = smov [#allocation9]   ;;  %s371_s23 = sshll.u32 %s685_s7, 4  ;;  %s372_s23 = int_to_ptr.hbm [resolvable:$true] %s371_s23 }
   0xf   :  { %479 = vset.pattern.permute.xlu1 %v564_v26  ;;  %387 = vmatmul.msk.f32.vlgmr.msra.gmra.mxu2 %vm186_vm5, %v331_v48  ;;  %v332_v63 = vld [vmem:[%s684_s6] sm:$0xff]  ;;  %s369_s6 = sshll.u32 %s565_s4, 4  ;;  %s566_s24 = smov 128   ;;  %s370_s6 = int_to_ptr.vmem [resolvable:$true] %s369_s6 }
  0x10   :  { %s567_s25 = smov 8  }
  0x13   :  { %v62_v2 = vld [vmem:[#allocation2] sm:$0xff] }
  0x14   :  { %v275_v56 = vld [vmem:[#allocation3] sm:$0xff] }
  0x15   :  { %v63_v4 = vld [vmem:[#allocation2 + $0x8] sm:$0xff] }
  0x16   :  { %215 = vst.msk [vmem:[#allocation2 + $0x8] sm:$0xff] %vm59_vm1, %v621_v3  ;;  %v427_v5 = vpack.i.bf16 %v63_v4, %v62_v2 }
  0x18   :  { %403 = vrot.lane.b32.xlu0 %v427_v5, %s561_s13 }
  0x1d   :  { %v218_v6 = vld [vmem:[#allocation2 + $0x8] sm:$0xff] }
  0x1e   :  { %v407_v7 = vpack.i.bf16 %v218_v6, %v63_v4  ;;  %v437_v8 = vpack.i.bf16 %v218_v6, %v62_v2 }
  0x20   :  { %408 = vrot.lane.b32.xlu0 %v407_v7, %s562_s14  ;;  %413 = vrot.lane.b32.xlu1 %v437_v8, %s561_s13 }
  0x8a   :  { %v404_v9 = vpop.permute.xlu0 %403 }
  0x8b   :  { %v406_v10 = vunpack.i.h.bf16 %v404_v9  ;;  %v405_v11 = vunpack.i.l.bf16 %v404_v9 }
  0x8d   :  { %v71_v18 = vsel %vm70_vm2, %v405_v11, %v406_v10 }
  0x92   :  { %v409_v12 = vpop.permute.xlu0 %408  ;;  %v414_v13 = vpop.permute.xlu1 %413 }
  0x93   :  { %v411_v14 = vunpack.i.h.bf16 %v409_v12  ;;  %v410_v15 = vunpack.i.l.bf16 %v409_v12  ;;  %v416_v16 = vunpack.i.h.bf16 %v414_v13  ;;  %v415_v17 = vunpack.i.l.bf16 %v414_v13 }
  0x95   :  { %v417_v19 = vpack.i.bf16 %v71_v18, %v410_v15  ;;  %v225_v20 = vsel %vm70_vm2, %v415_v17, %v416_v16  ;;  %v422_v21 = vpack.i.bf16 %v411_v14, %v406_v10 }
  0x96   :  { %v432_v22 = vpack.i.bf16 %v416_v16, %v225_v20 }
  0x97   :  { %423 = vrot.lane.b32.xlu2 %v422_v21, %s563_s0  ;;  %418 = vrot.lane.b32.xlu1 %v417_v19, %s563_s0  ;;  %v274_v21 = vld [vmem:[#allocation4] sm:$0xff] }
  0x98   :  { %433 = vrot.lane.b32.xlu0 %v432_v22, %s563_s0 }
  0x9f   :  { %438 = vrot.lane.b32.xlu1 %v437_v8, %s563_s0  ;;  %428 = vrot.lane.b32.xlu2 %v427_v5, %s563_s0 }
  0xa0   :  { %231 = vperm.xlu0 %443, %v228_v25  }
  0xa7   :  { %77 = vperm.xlu2 %442, %v228_v25  }
  0xf1   :  { %v424_v23 = vpop.permute.xlu2 %423 }
  0xf2   :  { %v426_v24 = vunpack.i.h.bf16 %v424_v23  ;;  %v425_v31 = vunpack.i.l.bf16 %v424_v23 }
  0xf4   :  { %265 = vmatpush.msra.mxu3 %v426_v24 }
  0xf9   :  { %v429_v27 = vpop.permute.xlu2 %428 }
  0xfa   :  { %v431_v29 = vunpack.i.h.bf16 %v429_v27  ;;  %v430_v30 = vunpack.i.l.bf16 %v429_v27 }
  0xfc   :  { %v91_v39 = vsel %vm90_vm3, %v430_v30, %v431_v29 }
 0x101   :  { %v78_v45 = vpop.permute.xlu2 %77 }
 0x109   :  { %v419_v28 = vpop.permute.xlu1 %418 }
 0x10a   :  { %v421_v32 = vunpack.i.h.bf16 %v419_v28  ;;  %v420_v33 = vunpack.i.l.bf16 %v419_v28  ;;  %v434_v34 = vpop.permute.xlu0 %433 }
 0x10b   :  { %v436_v35 = vunpack.i.h.bf16 %v434_v34  ;;  %v435_v36 = vunpack.i.l.bf16 %v434_v34 }
 0x10c   :  { %113 = vmatpush.msra.mxu0 %v420_v33  ;;  %v92_v37 = vsel %vm90_vm3, %v421_v32, %v425_v31  ;;  %v207_v32 = vpop.f32.mrf.mxu2 }
 0x10d   :  { %v245_v38 = vsel %vm90_vm3, %v435_v36, %v436_v35 }
 0x10e   :  { %114 = vmatpush.msra.mxu0 %v92_v37  ;;  %266 = vmatpush.msra.mxu3 %v245_v38 }
 0x110   :  { %115 = vmatpush.msra.mxu0 %v91_v39 }
 0x111   :  { %v439_v41 = vpop.permute.xlu1 %438  ;;  %385 = vmatmul.msk.f32.vlgmr.msra.gmra.mxu0 %vm96_vm4, %v61_v40 }
 0x112   :  { %v441_v42 = vunpack.i.h.bf16 %v439_v41  ;;  %v440_v43 = vunpack.i.l.bf16 %v439_v41  ;;  %356 = vmatpush.msrb.mxu0 %v621_v3  ;;  %v232_v50 = vpop.permute.xlu0 %231 }
 0x114   :  { %v244_v44 = vsel %vm90_vm3, %v440_v43, %v441_v42 }
 0x115   :  { %267 = vmatpush.msra.mxu3 %v244_v44 }
 0x116   :  { %389 = vmatmul.msk.f32.vlgmr.msra.gmra.mxu3 %vm96_vm4, %v61_v40 }
 0x119   :  { %391 = vmatmul.msk.f32.vlgmr.msrb.gmra.mxu0 %vm186_vm5, %v331_v48 }
 0x18e   :  { %v117_v46 = vpop.f32.mrf.mxu0 }
 0x18f   :  { %v118_v47 = vadd.f32 %v117_v46, %v78_v45 }
 0x191   :  { %v120_v49 = vmax.f32 %v118_v47, 0.0 }
 0x193   :  { %121 = vst.msk [vmem:[#allocation3 + $0x8] sm:$0xff] %vm59_vm1, %v120_v49 }
 0x196   :  { %v358_v33 = vpop.f32.mrf.mxu0 }
 0x199   :  { %v269_v51 = vpop.f32.mrf.mxu3 }
 0x19a   :  { %v270_v52 = vadd.f32 %v269_v51, %v232_v50  ;;  %v124_v53 = vld [vmem:[#allocation3 + $0x8] sm:$0xff] }
 0x19b   :  { %v449_v58 = vpack.i.bf16 %v124_v53, %v275_v56 }
 0x19c   :  { %v272_v54 = vmax.f32 %v270_v52, 0.0 }
 0x19e   :  { %273 = vst.msk [vmem:[#allocation3 + $0x8] sm:$0xff] %vm59_vm1, %v272_v54 }
 0x1a5   :  { %v276_v55 = vld [vmem:[#allocation3 + $0x8] sm:$0xff] }
 0x1a6   :  { %284 = vrot.lane.b32.xlu2 %v276_v55, %s562_s14  ;;  %v444_v57 = vpack.i.bf16 %v276_v55, %v275_v56 }
 0x1a8   :  { %445 = vrot.lane.b32.xlu1 %v444_v57, %s561_s13 }
 0x1ae   :  { %132 = vrot.lane.b32.xlu2 %v124_v53, %s562_s14 }
 0x1b0   :  { %450 = vrot.lane.b32.xlu1 %v449_v58, %s561_s13 }
 0x200   :  { %v285_v59 = vpop.permute.xlu2 %284 }
 0x208   :  { %v133_v60 = vpop.permute.xlu2 %132 }
 0x209   :  { %v454_v61 = vpack.i.bf16 %v133_v60, %v276_v55 }
 0x20b   :  { %455 = vrot.lane.b32.xlu2 %v454_v61, %s563_s0 }
 0x213   :  { %137 = vperm.xlu2 %442, %v134_v62  }
 0x21a   :  { %v446_v0 = vpop.permute.xlu1 %445 }
 0x21b   :  { %v448_v1 = vunpack.i.h.bf16 %v446_v0  ;;  %v447_v2 = vunpack.i.l.bf16 %v446_v0  ;;  %335 = vperm.xlu2 %442, %v332_v63  }
 0x21d   :  { %v459_v3 = vpack.i.bf16 %v275_v56, %v448_v1  ;;  %v283_v4 = vsel %vm70_vm2, %v447_v2, %v448_v1 }
 0x21e   :  { %v464_v5 = vpack.i.bf16 %v283_v4, %v285_v59 }
 0x21f   :  { %460 = vrot.lane.b32.xlu1 %v459_v3, %s563_s0 }
 0x220   :  { %465 = vrot.lane.b32.xlu0 %v464_v5, %s563_s0 }
 0x222   :  { %v451_v6 = vpop.permute.xlu1 %450 }
 0x223   :  { %v453_v7 = vunpack.i.h.bf16 %v451_v6  ;;  %v452_v8 = vunpack.i.l.bf16 %v451_v6 }
 0x225   :  { %v131_v9 = vsel %vm70_vm2, %v452_v8, %v453_v7 }
 0x226   :  { %v469_v10 = vpack.i.bf16 %v453_v7, %v131_v9 }
 0x227   :  { %475 = vrot.lane.b32.xlu1 %v449_v58, %s563_s0 }
 0x228   :  { %470 = vrot.lane.b32.xlu0 %v469_v10, %s563_s0 }
 0x22f   :  { %183 = vperm.xlu1 %479, %v332_v63  }
 0x230   :  { %289 = vperm.xlu0 %443, %v134_v62  }
 0x265   :  { %v456_v11 = vpop.permute.xlu2 %455 }
 0x266   :  { %v458_v12 = vunpack.i.h.bf16 %v456_v11  ;;  %v457_v20 = vunpack.i.l.bf16 %v456_v11 }
 0x268   :  { %171 = vmatpush.msra.mxu1 %v458_v12 }
 0x26d   :  { %v138_v31 = vpop.permute.xlu2 %137 }
 0x275   :  { %v336_v34 = vpop.permute.xlu2 %335 }
 0x276   :  { %v359_v41 = vadd.f32 %v358_v33, %v336_v34 }
 0x291   :  { %v461_v13 = vpop.permute.xlu1 %460 }
 0x292   :  { %v462_v14 = vunpack.i.l.bf16 %v461_v13  ;;  %v466_v15 = vpop.permute.xlu0 %465  ;;  %v463_v18 = vunpack.i.h.bf16 %v461_v13 }
 0x293   :  { %v468_v16 = vunpack.i.h.bf16 %v466_v15  ;;  %v467_v17 = vunpack.i.l.bf16 %v466_v15 }
 0x294   :  { %v302_v22 = vsel %vm90_vm3, %v463_v18, %v457_v20 }
 0x295   :  { %323 = vmatpush.msrb.mxu2 %v467_v17  ;;  %v303_v19 = vsel %vm90_vm3, %v468_v16, %v462_v14 }
 0x297   :  { %324 = vmatpush.msrb.mxu2 %v303_v19 }
 0x299   :  { %v476_v23 = vpop.permute.xlu1 %475  ;;  %325 = vmatpush.msrb.mxu2 %v302_v22 }
 0x29a   :  { %v471_v24 = vpop.permute.xlu0 %470  ;;  %390 = vmatmul.msk.f32.vlgmr.msrb.gmra.mxu2 %vm96_vm4, %v274_v21  ;;  %v478_v25 = vunpack.i.h.bf16 %v476_v23  ;;  %v477_v26 = vunpack.i.l.bf16 %v476_v23 }
 0x29b   :  { %v473_v27 = vunpack.i.h.bf16 %v471_v24  ;;  %v472_v28 = vunpack.i.l.bf16 %v471_v24 }
 0x29c   :  { %v150_v30 = vsel %vm90_vm3, %v477_v26, %v478_v25 }
 0x29d   :  { %v151_v29 = vsel %vm90_vm3, %v472_v28, %v473_v27 }
 0x29e   :  { %172 = vmatpush.msra.mxu1 %v151_v29 }
 0x2a0   :  { %173 = vmatpush.msra.mxu1 %v150_v30 }
 0x2a1   :  { %386 = vmatmul.msk.f32.vlgmr.msra.gmra.mxu1 %vm96_vm4, %v274_v21  ;;  %v184_v37 = vpop.permute.xlu1 %183 }
 0x2a2   :  { %v290_v35 = vpop.permute.xlu0 %289  ;;  %v208_v43 = vadd.f32 %v207_v32, %v184_v37 }
 0x31d   :  { %v327_v36 = vpop.f32.mrf.mxu2 }
 0x31e   :  { %v328_v38 = vadd.f32 %v327_v36, %v290_v35  ;;  %v175_v39 = vpop.f32.mrf.mxu1 }
 0x31f   :  { %v176_v40 = vadd.f32 %v175_v39, %v138_v31 }
 0x320   :  { %v330_v42 = vmax.f32 %v328_v38, 0.0 }
 0x321   :  { %v178_v44 = vmax.f32 %v176_v40, 0.0 }
 0x322   :  { %v361_v45 = vadd.f32 %v359_v41, %v330_v42 }
 0x323   :  { %v210_v46 = vadd.f32 %v208_v43, %v178_v44 }
 0x324   :  { %v362_v47 = vmax.f32 %v361_v45, 0.0 }
 0x325   :  { %v211_v48 = vmax.f32 %v210_v46, 0.0 }
 0x326   :  { %364 = vst.msk [vmem:[#allocation9 + $0x8] sm:$0xff] %vm59_vm1, %v362_v47 }
 0x327   :  { %212 = vst.msk [vmem:[#allocation9] sm:$0xff] %vm59_vm1, %v211_v48 }
 0x328   :  { %377 = dma.vmem_to_hbm [thread:$0]  %s370_s6, 256, %s372_s23, [#allocation6], %s566_s24, %s566_s24, %s567_s25  }
 0x329   :  { %556 = dma.done.wait [#allocation6], 256  }
 0x32a   :  { %557 = vsyncadd [#allocation6], 4294967040 }
 0x32b   :  { %382 = vsyncpa [#allocation5], 1 }
 0x32c   :  { %383 = vsyncpa [#allocation8], 1 }
 0x32d   :  { %384 = vsyncpa [#allocation6], 1 }

</bundles_post_ra>
